<compile_context>
chip_gen: v5e
topology: v5e:2x2
jax: 0.10.0
libtpu: 0.0.40
codegen_flags: <defaults>
</compile_context>

<pallas_src>
import jax
import jax.numpy as jnp
from jax.experimental import pallas as pl
from jax.experimental.pallas import tpu as pltpu


def _round_up(x, m):
    return ((x + m - 1) // m) * m


def _linear_rowsum_kernel(x_ref, w_ref, b_ref, o_ref):
    # x_ref: (tb, IN) f32 VMEM  -- natural layout straight from HBM
    # w_ref: (1, IN)  f32 VMEM  -- broadcast over the batch (sublane) axis
    # b_ref: (OUT,)   f32 SMEM  -- single scalar
    # o_ref: (tb, OUT) f32 VMEM
    prod = x_ref[...] * w_ref[...]                       # one dense VPU multiply
    acc = jnp.sum(prod, axis=1, keepdims=True)           # minor-axis reduce (XLU slot)
    o_ref[...] = (acc + b_ref[0]).astype(o_ref.dtype)


def recommendation_model_forward(x, weight, bias, *, tb=None, use_pallas=None):
    """Forward pass of nn.Linear(10, 1).

    x:      (B, IN)   f32
    weight: (OUT, IN) f32  (PyTorch layout; OUT must be 1)
    bias:   (OUT,)    f32
    returns (B, OUT)  f32
    """
    B, IN = x.shape
    OUT = weight.shape[0]
    assert OUT == 1 and weight.shape[1] == IN

    if use_pallas is None:
        # Tiny batches are launch-overhead dominated: let XLA fuse them instead.
        use_pallas = B >= 4096
    if not use_pallas:
        return x @ weight.T + bias

    if tb is None:
        # Batch tile (sublane axis, multiple of 8): big enough to amortize the
        # ~0.35 us/step overhead, small enough that the 128-lane padded VMEM
        # buffers (in + out, double-buffered) stay well under the scoped limit,
        # and split so v7x's two TensorCores both get a grid step.
        tb = min(8192, max(512, _round_up(pl.cdiv(B, 2), 512)))
    tb = max(8, min(_round_up(tb, 8), _round_up(B, 8)))
    n_tiles = pl.cdiv(B, tb)

    w_row = weight.reshape(1, IN).astype(x.dtype)
    b_vec = bias.reshape(OUT).astype(x.dtype)

    cost = pl.CostEstimate(
        flops=2 * B * IN,
        transcendentals=0,
        bytes_accessed=(B * IN + B * OUT + IN + OUT) * x.dtype.itemsize,
    )

    return pl.pallas_call(
        _linear_rowsum_kernel,
        out_shape=jax.ShapeDtypeStruct((B, OUT), x.dtype),
        grid=(n_tiles,),
        in_specs=[
            pl.BlockSpec((tb, IN), lambda i: (i, 0)),              # x tile (natural layout)
            pl.BlockSpec((1, IN), lambda i: (0, 0)),               # weight row, resident
            pl.BlockSpec(memory_space=pltpu.MemorySpace.SMEM),     # bias scalar
        ],
        out_specs=pl.BlockSpec((tb, OUT), lambda i: (i, 0)),
        compiler_params=pltpu.CompilerParams(
            dimension_semantics=("parallel",),      # v7x: both TCs split the batch grid
            vmem_limit_bytes=40 * 1024 * 1024,      # cover lane-padded tiles on v5e too
        ),
        cost_estimate=cost,
    )(x, w_row, b_vec)


if __name__ == "__main__":
    key = jax.random.PRNGKey(0)
    k_x, k_w, k_b, k_x2 = jax.random.split(key, 4)

    B, IN, OUT = 8, 10, 1

    # Deterministic init mimicking nn.Linear default: U(-1/sqrt(IN), 1/sqrt(IN))
    bound = 1.0 / jnp.sqrt(jnp.float32(IN))
    weight = jax.random.uniform(k_w, (OUT, IN), jnp.float32, -bound, bound)  # (out, in)
    bias = jax.random.uniform(k_b, (OUT,), jnp.float32, -bound, bound)

    # Small-batch case through the Pallas kernel (forced; matches nominal module use).
    x = jax.random.normal(k_x, (B, IN), jnp.float32)
    out = recommendation_model_forward(x, weight, bias, use_pallas=True)
    jax.block_until_ready(out)
    ref = x @ weight.T + bias
    assert out.shape == (B, OUT)
    assert jnp.allclose(out, ref, atol=1e-5, rtol=1e-5)

    # Default dispatch at tiny batch -> XLA fast path; must agree too.
    out_fast = recommendation_model_forward(x, weight, bias)
    jax.block_until_ready(out_fast)
    assert jnp.allclose(out_fast, ref, atol=1e-5, rtol=1e-5)

    # Larger ragged batch: multi-tile grid (grid=(5,)) with a partial last block,
    # exercising the no-padding edge-block path.
    B2 = 260
    x2 = jax.random.normal(k_x2, (B2, IN), jnp.float32)
    out2 = recommendation_model_forward(x2, weight, bias, tb=64, use_pallas=True)
    jax.block_until_ready(out2)
    ref2 = x2 @ weight.T + bias
    assert out2.shape == (B2, OUT)
    assert jnp.allclose(out2, ref2, atol=1e-5, rtol=1e-5)

    print("KERNEL_OK")
</pallas_src>

<mosaic_0001>
module attributes {stable_mosaic.version = 11 : i64} {
  func.func @_linear_rowsum_kernel(%arg0: i32, %arg1: memref<8x10xf32, #tpu.memory_space<vmem>>, %arg2: memref<1x10xf32, #tpu.memory_space<vmem>>, %arg3: memref<1xf32, #tpu.memory_space<smem>>, %arg4: memref<8x1xf32, #tpu.memory_space<vmem>>) attributes {dimension_semantics = [#tpu.dimension_semantics<parallel>], iteration_bounds = array<i64: 1>, scalar_prefetch = 0 : i64, scratch_operands = 0 : i64, tpu.core_type = #tpu.core_type<tc>, window_params = [{transform_indices = @transform_0, window_bounds = array<i64: 8, 10>}, {pipeline_mode = #tpu.pipeline_mode<synchronous>, transform_indices = @transform_1, window_bounds = array<i64: 1, 10>}, {transform_indices = @transform_2, window_bounds = array<i64: 1>}, {transform_indices = @transform_3, window_bounds = array<i64: 8, 1>}]} {
    %c0 = arith.constant 0 : index
    %c0_0 = arith.constant 0 : index
    %0 = vector.load %arg1[%c0, %c0_0] : memref<8x10xf32, #tpu.memory_space<vmem>>, vector<8x10xf32>
    %c0_1 = arith.constant 0 : index
    %c0_2 = arith.constant 0 : index
    %1 = vector.load %arg2[%c0_1, %c0_2] : memref<1x10xf32, #tpu.memory_space<vmem>>, vector<1x10xf32>
    %2 = vector.broadcast %1 : vector<1x10xf32> to vector<8x10xf32>
    %3 = arith.mulf %0, %2 : vector<8x10xf32>
    %cst = arith.constant dense<0.000000e+00> : vector<8xf32>
    %4 = vector.multi_reduction <add>, %3, %cst [1] : vector<8x10xf32> to vector<8xf32>
    %5 = vector.shape_cast %4 : vector<8xf32> to vector<8x1xf32>
    %c0_3 = arith.constant 0 : index
    %6 = memref.load %arg3[%c0_3] : memref<1xf32, #tpu.memory_space<smem>>
    %7 = vector.broadcast %6 : f32 to vector<8x1xf32>
    %8 = arith.addf %5, %7 : vector<8x1xf32>
    %c0_4 = arith.constant 0 : index
    %c0_5 = arith.constant 0 : index
    %9 = vector.load %arg4[%c0_4, %c0_5] : memref<8x1xf32, #tpu.memory_space<vmem>>, vector<8x1xf32>
    tpu.vector_store %arg4[%c0_4, %c0_5], %8 {strides = array<i32>} : memref<8x1xf32, #tpu.memory_space<vmem>>, vector<8x1xf32>,
    return
  }
  func.func @transform_0(%arg0: i32) -> (i32, i32) {
    %c0_i32 = arith.constant 0 : i32
    %c0_i32_0 = arith.constant 0 : i32
    return %arg0, %c0_i32 : i32, i32
  }
  func.func @transform_1(%arg0: i32) -> (i32, i32) {
    %c0_i32 = arith.constant 0 : i32
    %c0_i32_0 = arith.constant 0 : i32
    %c0_i32_1 = arith.constant 0 : i32
    return %c0_i32, %c0_i32_0 : i32, i32
  }
  func.func @transform_2(%arg0: i32) -> i32 {
    %c0_i32 = arith.constant 0 : i32
    %c0_i32_0 = arith.constant 0 : i32
    return %c0_i32 : i32
  }
  func.func @transform_3(%arg0: i32) -> (i32, i32) {
    %c0_i32 = arith.constant 0 : i32
    %c0_i32_0 = arith.constant 0 : i32
    return %arg0, %c0_i32 : i32, i32
  }
}

</mosaic_0001>

<bundles_post_ra>
// kernel: tpu_custom_call.1
= control target key start
LH: loop header
LB: loop body
LE: loop exit
PB: predicated region body
PF: predicated region fallthrough
CT: control target
= control target key end

     0   :  { %9 = vsyncpa [#allocation4], 0  ;;  %s77_s15 = smov [#allocation3]   ;;  %s110_s0 = inlined_call_operand.hbm [shape: f32[8,10], index: 0, kind: input, shape index: {}]   ;;  %s111_s1 = inlined_call_operand.vmem [shape: f32[1,10], index: 1, kind: input, shape index: {}]   ;;  %s112_s2 = inlined_call_operand.<no memory space> [shape: f32[1], index: 2, kind: input, shape index: {}]   ;;  %s113_s3 = inlined_call_operand.vmem [shape: f32[8,1], index: 3, kind: output, shape index: {}]  }
   0x1   :  { %s15_s14 = sshll.u32 %s110_s0, 4  ;;  %s17_s16 = sshll.u32 %s77_s15, 4  ;;  %s16_s14 = int_to_ptr.hbm [resolvable:$true] %s15_s14  ;;  %s18_s16 = int_to_ptr.vmem [resolvable:$true] %s17_s16 }
   0x2   :  { %20 = dma.hbm_to_vmem [thread:$0]  %s16_s14, 128, %s18_s16, [#allocation4]  }
   0x3   :  { %75 = dma.done.wait [#allocation4], 128  }
   0x4   :  { %76 = vsyncadd [#allocation4], 4294967168  ;;  %v29_v0 = vld [vmem:[#allocation3] sm:$0xff]  ;;  %vm35_vm0 = vcmask 80896   ;;  %v40_v4 = vstv %s112_s2  ;;  %vm42_vm1 = vcmask 7168  }
   0x5   :  { %v50_v1 = vld [vmem:[%s111_s1] ss:$0 sm:$0xff] }
   0x6   :  { %v34_v2 = vmul.f32 %v50_v1, %v29_v0 }
   0x8   :  { %v36_v3 = vsel %vm35_vm0, %v34_v2, 0.0 }
   0x9   :  { %37 = vadd.xlane.f32.xlu0 %v36_v3 }
  0x7c   :  { %v38_v5 = vpop.xlane.xlu0 %37 }
  0x7d   :  { %v41_v6 = vadd.f32 %v40_v4, %v38_v5 }
  0x7f   :  { %43 = vst.msk [vmem:[%s113_s3] sm:$0xff] %vm42_vm1, %v41_v6 }
  0x80   :  { %48 = vsyncpa [#allocation4], 1 }

</bundles_post_ra>
